<compile_context>
chip_gen: v5e
topology: v5e:2x2
jax: 0.10.0
libtpu: 0.0.40
codegen_flags: <defaults>
</compile_context>

<pallas_src>
import functools

import jax
import jax.numpy as jnp
from jax.experimental import pallas as pl
from jax.experimental.pallas import tpu as pltpu


# TODO(synk): PyTorch nn.GELU() defaults to the exact erf formulation; we use the tanh
# approximation (max abs deviation ~1e-3) because tanh lowers to the EUP on every TPU
# generation, whereas erf lowering is not guaranteed in Mosaic.
def _gelu_tanh(x):
    c = 0.7978845608028654  # sqrt(2/pi)
    return 0.5 * x * (1.0 + jnp.tanh(c * (x + 0.044715 * x * x * x)))


def _token_mix_kernel(x_ref, g_ref, bt_ref, w1_ref, b1_ref, w2_ref, b2_ref,
                      o_ref, *, eps):
    # x_ref: (F, ts) feature-major tile (native layout of the (B, F, S) input).
    x = x_ref[...].astype(jnp.float32)

    # LayerNorm over the feature axis (axis 0).
    mean = jnp.mean(x, axis=0, keepdims=True)            # (1, ts)
    cent = x - mean
    var = jnp.mean(cent * cent, axis=0, keepdims=True)   # (1, ts)
    y = cent * jax.lax.rsqrt(var + eps)
    y = y * g_ref[...] + bt_ref[...]                     # gamma/beta: (F, 1)

    # linear1 + GELU:  (H, F) @ (F, ts) -> (H, ts)   (MXU, f32 accumulation)
    h = jnp.dot(w1_ref[...], y, preferred_element_type=jnp.float32) + b1_ref[...]
    h = _gelu_tanh(h)

    # linear2: (F, H) @ (H, ts) -> (F, ts)
    out = jnp.dot(w2_ref[...], h, preferred_element_type=jnp.float32) + b2_ref[...]
    o_ref[...] = out.astype(o_ref.dtype)


def token_mix_forward(x, ln_gamma, ln_beta, w1, b1, w2, b2, *, eps=1e-5):
    """Pallas implementation of token_mix.forward.

    x:        (B, F, S)  with F == in_dim
    ln_gamma: (F,)   ln_beta: (F,)          LayerNorm affine params
    w1:       (H, F)  b1: (H,)              nn.Linear(in_dim, hidden_dim)
    w2:       (F, H)  b2: (F,)              nn.Linear(hidden_dim, in_dim)
    returns   (B, F, S)
    """
    B, F, S = x.shape
    H = w1.shape[0]
    assert w1.shape == (H, F) and w2.shape == (F, H)
    assert ln_gamma.shape == (F,) and ln_beta.shape == (F,)

    # Sequence tile: lane-dense (multiple of 128, up to 512) when S allows, else full S.
    if S % 128 == 0:
        ts = next(t for t in (512, 256, 128) if S % t == 0)
        ts = min(ts, S)
    else:
        ts = S
    grid = (B, S // ts)

    # Tiny host-side reshapes of the 1-D params only (no tensor transposes / copies).
    g2 = ln_gamma.reshape(F, 1).astype(jnp.float32)
    bt2 = ln_beta.reshape(F, 1).astype(jnp.float32)
    b1c = b1.reshape(H, 1).astype(jnp.float32)
    b2c = b2.reshape(F, 1).astype(jnp.float32)

    kernel = functools.partial(_token_mix_kernel, eps=eps)

    return pl.pallas_call(
        kernel,
        out_shape=jax.ShapeDtypeStruct((B, F, S), x.dtype),
        grid_spec=pltpu.PrefetchScalarGridSpec(
            num_scalar_prefetch=0,
            grid=grid,
            in_specs=[
                pl.BlockSpec((None, F, ts), lambda b, s: (b, 0, s)),  # x tile
                pl.BlockSpec((F, 1), lambda b, s: (0, 0)),            # ln gamma
                pl.BlockSpec((F, 1), lambda b, s: (0, 0)),            # ln beta
                pl.BlockSpec((H, F), lambda b, s: (0, 0)),            # w1
                pl.BlockSpec((H, 1), lambda b, s: (0, 0)),            # b1
                pl.BlockSpec((F, H), lambda b, s: (0, 0)),            # w2
                pl.BlockSpec((F, 1), lambda b, s: (0, 0)),            # b2
            ],
            out_specs=pl.BlockSpec((None, F, ts), lambda b, s: (b, 0, s)),
        ),
        compiler_params=pltpu.CompilerParams(
            dimension_semantics=("parallel", "parallel"),
            vmem_limit_bytes=32 * 1024 * 1024,
        ),
    )(x, g2, bt2, w1, b1c, w2, b2c)


if __name__ == "__main__":
    # Small shapes consistent with the module: x is (batch, in_dim, seq).
    B, in_dim, seq, hidden = 2, 16, 64, 32

    key = jax.random.PRNGKey(0)
    kx, kg, kb, kw1, kb1, kw2, kb2 = jax.random.split(key, 7)

    x = jax.random.normal(kx, (B, in_dim, seq), dtype=jnp.float32)

    gamma = 1.0 + 0.1 * jax.random.normal(kg, (in_dim,), dtype=jnp.float32)
    beta = 0.1 * jax.random.normal(kb, (in_dim,), dtype=jnp.float32)

    bound1 = 1.0 / (in_dim ** 0.5)
    w1 = jax.random.uniform(kw1, (hidden, in_dim), jnp.float32, -bound1, bound1)
    b1 = jax.random.uniform(kb1, (hidden,), jnp.float32, -bound1, bound1)
    bound2 = 1.0 / (hidden ** 0.5)
    w2 = jax.random.uniform(kw2, (in_dim, hidden), jnp.float32, -bound2, bound2)
    b2 = jax.random.uniform(kb2, (in_dim,), jnp.float32, -bound2, bound2)

    out = token_mix_forward(x, gamma, beta, w1, b1, w2, b2)
    out = jax.block_until_ready(out)

    # Pure-JAX reference mirroring token_mix.forward.
    xt = jnp.transpose(x, (0, 2, 1))                      # b f s -> b s f
    mean = jnp.mean(xt, axis=-1, keepdims=True)
    var = jnp.mean((xt - mean) ** 2, axis=-1, keepdims=True)
    xn = (xt - mean) * jax.lax.rsqrt(var + 1e-5)
    y = xn * gamma + beta
    h = _gelu_tanh(y @ w1.T + b1)
    o = h @ w2.T + b2
    ref = jnp.transpose(o, (0, 2, 1))                     # b s f -> b f s

    assert out.shape == (B, in_dim, seq), out.shape
    max_err = float(jnp.max(jnp.abs(out - ref)))
    assert jnp.allclose(out, ref, atol=1e-4, rtol=1e-4), max_err

    print("KERNEL_OK")
</pallas_src>

<mosaic_0001>
module attributes {stable_mosaic.version = 11 : i64} {
  func.func @_token_mix_kernel(%arg0: i32, %arg1: i32, %arg2: memref<1x16x64xf32, #tpu.memory_space<vmem>>, %arg3: memref<16x1xf32, #tpu.memory_space<vmem>>, %arg4: memref<16x1xf32, #tpu.memory_space<vmem>>, %arg5: memref<32x16xf32, #tpu.memory_space<vmem>>, %arg6: memref<32x1xf32, #tpu.memory_space<vmem>>, %arg7: memref<16x32xf32, #tpu.memory_space<vmem>>, %arg8: memref<16x1xf32, #tpu.memory_space<vmem>>, %arg9: memref<1x16x64xf32, #tpu.memory_space<vmem>>) attributes {dimension_semantics = [#tpu.dimension_semantics<parallel>, #tpu.dimension_semantics<parallel>], iteration_bounds = array<i64: 2, 1>, scalar_prefetch = 0 : i64, scratch_operands = 0 : i64, tpu.core_type = #tpu.core_type<tc>, window_params = [{transform_indices = @transform_0, window_bounds = array<i64: 1, 16, 64>}, {pipeline_mode = #tpu.pipeline_mode<synchronous>, transform_indices = @transform_1, window_bounds = array<i64: 16, 1>}, {pipeline_mode = #tpu.pipeline_mode<synchronous>, transform_indices = @transform_2, window_bounds = array<i64: 16, 1>}, {pipeline_mode = #tpu.pipeline_mode<synchronous>, transform_indices = @transform_3, window_bounds = array<i64: 32, 16>}, {pipeline_mode = #tpu.pipeline_mode<synchronous>, transform_indices = @transform_4, window_bounds = array<i64: 32, 1>}, {pipeline_mode = #tpu.pipeline_mode<synchronous>, transform_indices = @transform_5, window_bounds = array<i64: 16, 32>}, {pipeline_mode = #tpu.pipeline_mode<synchronous>, transform_indices = @transform_6, window_bounds = array<i64: 16, 1>}, {transform_indices = @transform_7, window_bounds = array<i64: 1, 16, 64>}]} {
    %c0 = arith.constant 0 : index
    %c0_0 = arith.constant 0 : index
    %c0_1 = arith.constant 0 : index
    %0 = vector.load %arg2[%c0, %c0_0, %c0_1] : memref<1x16x64xf32, #tpu.memory_space<vmem>>, vector<1x16x64xf32>
    %1 = vector.shape_cast %0 : vector<1x16x64xf32> to vector<16x64xf32>
    %cst = arith.constant dense<0.000000e+00> : vector<64xf32>
    %2 = vector.multi_reduction <add>, %1, %cst [0] : vector<16x64xf32> to vector<64xf32>
    %3 = vector.shape_cast %2 : vector<64xf32> to vector<1x64xf32>
    %cst_2 = arith.constant 1.600000e+01 : f32
    %4 = vector.broadcast %cst_2 : f32 to vector<1x64xf32>
    %5 = arith.divf %3, %4 : vector<1x64xf32>
    %6 = vector.broadcast %5 : vector<1x64xf32> to vector<16x64xf32>
    %7 = arith.subf %1, %6 : vector<16x64xf32>
    %8 = arith.mulf %7, %7 : vector<16x64xf32>
    %cst_3 = arith.constant dense<0.000000e+00> : vector<64xf32>
    %9 = vector.multi_reduction <add>, %8, %cst_3 [0] : vector<16x64xf32> to vector<64xf32>
    %10 = vector.shape_cast %9 : vector<64xf32> to vector<1x64xf32>
    %cst_4 = arith.constant 1.600000e+01 : f32
    %11 = vector.broadcast %cst_4 : f32 to vector<1x64xf32>
    %12 = arith.divf %10, %11 : vector<1x64xf32>
    %cst_5 = arith.constant 9.99999974E-6 : f32
    %13 = vector.broadcast %cst_5 : f32 to vector<1x64xf32>
    %14 = arith.addf %12, %13 : vector<1x64xf32>
    %15 = math.rsqrt %14 : vector<1x64xf32>
    %16 = vector.broadcast %15 : vector<1x64xf32> to vector<16x64xf32>
    %17 = arith.mulf %7, %16 : vector<16x64xf32>
    %c0_6 = arith.constant 0 : index
    %c0_7 = arith.constant 0 : index
    %18 = vector.load %arg3[%c0_6, %c0_7] : memref<16x1xf32, #tpu.memory_space<vmem>>, vector<16x1xf32>
    %19 = vector.broadcast %18 : vector<16x1xf32> to vector<16x64xf32>
    %20 = arith.mulf %17, %19 : vector<16x64xf32>
    %c0_8 = arith.constant 0 : index
    %c0_9 = arith.constant 0 : index
    %21 = vector.load %arg4[%c0_8, %c0_9] : memref<16x1xf32, #tpu.memory_space<vmem>>, vector<16x1xf32>
    %22 = vector.broadcast %21 : vector<16x1xf32> to vector<16x64xf32>
    %23 = arith.addf %20, %22 : vector<16x64xf32>
    %c0_10 = arith.constant 0 : index
    %c0_11 = arith.constant 0 : index
    %24 = vector.load %arg5[%c0_10, %c0_11] : memref<32x16xf32, #tpu.memory_space<vmem>>, vector<32x16xf32>
    %cst_12 = arith.constant dense<0.000000e+00> : vector<32x64xf32>
    %25 = tpu.matmul %24, %23, %cst_12 {dimension_numbers = #tpu.dot_dimension_numbers<[1], [0], [0], [1], [0, 0, 1, 1], [], []>} : vector<32x16xf32>, vector<16x64xf32>, vector<32x64xf32> -> vector<32x64xf32>
    %c0_13 = arith.constant 0 : index
    %c0_14 = arith.constant 0 : index
    %26 = vector.load %arg6[%c0_13, %c0_14] : memref<32x1xf32, #tpu.memory_space<vmem>>, vector<32x1xf32>
    %27 = vector.broadcast %26 : vector<32x1xf32> to vector<32x64xf32>
    %28 = arith.addf %25, %27 : vector<32x64xf32>
    %cst_15 = arith.constant 5.000000e-01 : f32
    %29 = vector.broadcast %cst_15 : f32 to vector<32x64xf32>
    %30 = arith.mulf %29, %28 : vector<32x64xf32>
    %cst_16 = arith.constant 4.471500e-02 : f32
    %31 = vector.broadcast %cst_16 : f32 to vector<32x64xf32>
    %32 = arith.mulf %31, %28 : vector<32x64xf32>
    %33 = arith.mulf %32, %28 : vector<32x64xf32>
    %34 = arith.mulf %33, %28 : vector<32x64xf32>
    %35 = arith.addf %28, %34 : vector<32x64xf32>
    %cst_17 = arith.constant 0.797884583 : f32
    %36 = vector.broadcast %cst_17 : f32 to vector<32x64xf32>
    %37 = arith.mulf %36, %35 : vector<32x64xf32>
    %38 = math.tanh %37 : vector<32x64xf32>
    %cst_18 = arith.constant 1.000000e+00 : f32
    %39 = vector.broadcast %cst_18 : f32 to vector<32x64xf32>
    %40 = arith.addf %39, %38 : vector<32x64xf32>
    %41 = arith.mulf %30, %40 : vector<32x64xf32>
    %c0_19 = arith.constant 0 : index
    %c0_20 = arith.constant 0 : index
    %42 = vector.load %arg7[%c0_19, %c0_20] : memref<16x32xf32, #tpu.memory_space<vmem>>, vector<16x32xf32>
    %cst_21 = arith.constant dense<0.000000e+00> : vector<16x64xf32>
    %43 = tpu.matmul %42, %41, %cst_21 {dimension_numbers = #tpu.dot_dimension_numbers<[1], [0], [0], [1], [0, 0, 1, 1], [], []>} : vector<16x32xf32>, vector<32x64xf32>, vector<16x64xf32> -> vector<16x64xf32>
    %c0_22 = arith.constant 0 : index
    %c0_23 = arith.constant 0 : index
    %44 = vector.load %arg8[%c0_22, %c0_23] : memref<16x1xf32, #tpu.memory_space<vmem>>, vector<16x1xf32>
    %45 = vector.broadcast %44 : vector<16x1xf32> to vector<16x64xf32>
    %46 = arith.addf %43, %45 : vector<16x64xf32>
    %c0_24 = arith.constant 0 : index
    %c0_25 = arith.constant 0 : index
    %c0_26 = arith.constant 0 : index
    %47 = vector.load %arg9[%c0_24, %c0_25, %c0_26] : memref<1x16x64xf32, #tpu.memory_space<vmem>>, vector<1x16x64xf32>
    %48 = vector.shape_cast %47 : vector<1x16x64xf32> to vector<16x64xf32>
    %49 = vector.shape_cast %46 : vector<16x64xf32> to vector<1x16x64xf32>
    tpu.vector_store %arg9[%c0_24, %c0_25, %c0_26], %49 {strides = array<i32>} : memref<1x16x64xf32, #tpu.memory_space<vmem>>, vector<1x16x64xf32>,
    return
  }
  func.func @transform_0(%arg0: i32, %arg1: i32) -> (i32, i32, i32) {
    %c0_i32 = arith.constant 0 : i32
    %c0_i32_0 = arith.constant 0 : i32
    return %arg0, %c0_i32, %arg1 : i32, i32, i32
  }
  func.func @transform_1(%arg0: i32, %arg1: i32) -> (i32, i32) {
    %c0_i32 = arith.constant 0 : i32
    %c0_i32_0 = arith.constant 0 : i32
    %c0_i32_1 = arith.constant 0 : i32
    return %c0_i32, %c0_i32_0 : i32, i32
  }
  func.func @transform_2(%arg0: i32, %arg1: i32) -> (i32, i32) {
    %c0_i32 = arith.constant 0 : i32
    %c0_i32_0 = arith.constant 0 : i32
    %c0_i32_1 = arith.constant 0 : i32
    return %c0_i32, %c0_i32_0 : i32, i32
  }
  func.func @transform_3(%arg0: i32, %arg1: i32) -> (i32, i32) {
    %c0_i32 = arith.constant 0 : i32
    %c0_i32_0 = arith.constant 0 : i32
    %c0_i32_1 = arith.constant 0 : i32
    return %c0_i32, %c0_i32_0 : i32, i32
  }
  func.func @transform_4(%arg0: i32, %arg1: i32) -> (i32, i32) {
    %c0_i32 = arith.constant 0 : i32
    %c0_i32_0 = arith.constant 0 : i32
    %c0_i32_1 = arith.constant 0 : i32
    return %c0_i32, %c0_i32_0 : i32, i32
  }
  func.func @transform_5(%arg0: i32, %arg1: i32) -> (i32, i32) {
    %c0_i32 = arith.constant 0 : i32
    %c0_i32_0 = arith.constant 0 : i32
    %c0_i32_1 = arith.constant 0 : i32
    return %c0_i32, %c0_i32_0 : i32, i32
  }
  func.func @transform_6(%arg0: i32, %arg1: i32) -> (i32, i32) {
    %c0_i32 = arith.constant 0 : i32
    %c0_i32_0 = arith.constant 0 : i32
    %c0_i32_1 = arith.constant 0 : i32
    return %c0_i32, %c0_i32_0 : i32, i32
  }
  func.func @transform_7(%arg0: i32, %arg1: i32) -> (i32, i32, i32) {
    %c0_i32 = arith.constant 0 : i32
    %c0_i32_0 = arith.constant 0 : i32
    return %arg0, %c0_i32, %arg1 : i32, i32, i32
  }
}

</mosaic_0001>

<bundles_post_ra>
// kernel: tpu_custom_call.1
= control target key start
LH: loop header
LB: loop body
LE: loop exit
PB: predicated region body
PF: predicated region fallthrough
CT: control target
= control target key end

     0   :  { %12 = vsyncpa [#allocation3], 0  ;;  %s1000_s0 = inlined_call_operand.vmem [shape: f32[2,16,64], index: 0, kind: input, shape index: {}]   ;;  %s1001_s1 = inlined_call_operand.vmem [shape: f32[16,1], index: 1, kind: input, shape index: {}]   ;;  %s1002_s2 = inlined_call_operand.vmem [shape: f32[16,1], index: 2, kind: input, shape index: {}]   ;;  %s1003_s3 = inlined_call_operand.vmem [shape: f32[32,16], index: 3, kind: input, shape index: {}]   ;;  %s1004_s4 = inlined_call_operand.vmem [shape: f32[32,1], index: 4, kind: input, shape index: {}]   ;;  %s1005_s5 = inlined_call_operand.vmem [shape: f32[16,32], index: 5, kind: input, shape index: {}]   ;;  %s1006_s6 = inlined_call_operand.vmem [shape: f32[16,1], index: 6, kind: input, shape index: {}]   ;;  %s1007_s7 = inlined_call_operand.hbm [shape: f32[2,16,64], index: 7, kind: output, shape index: {}]  }
   0x1   :  { %14 = vsyncpa [#allocation3 + $0x1], 0  ;;  %s849_s24 = smov 0   ;;  %s851_s25 = smov 0  }
   0x2   :  { %s853_s26 = smov 0   ;;  %s855_s27 = smov 0  }
   0x3   :  { %s857_s28 = smov 0   ;;  %s859_s29 = smov 0  }
   0x4 LB: > { %s624_s30 = sadd.s32 4294967295, %s803_s29   ;;  %s625_s8 = sadd.s32 4294967294, %s803_s29   ;;  %s803_s29 = sphi %s859_s29, %s20_s29   ;;  %s799_s28 = sphi %s857_s28, %s1014_s28   ;;  %s795_s27 = sphi %s855_s27, %s1013_s27   ;;  %s791_s26 = sphi %s853_s26, %s1012_s26   ;;  %s787_s25 = sphi %s851_s25, %s1011_s25   ;;  %s783_s24 = sphi %s849_s24, %s1010_s24  }
   0x5   : > { %s32_s9 = sadd.s32 1, %s799_s28  ;;  %s195_s10 = sadd.s32 1, %s791_s26 }
   0x6   : > { %p34_p0 = scmp.ge.s32.totalorder %s32_s9, 2  ;;  %p205_p1 = scmp.ne.s32.totalorder %s791_s26, %s787_s25 }
   0x7   : > { %p206_p2 = scmp.eq.s32.totalorder %s624_s30, 1  ;;  %p211_p3 = scmp.ne.s32.totalorder %s787_s25, %s783_s24 }
   0x8   : > { %s1016_s9 = smov (%p34_p0, %s32_s9), 0  ;;  %p212_p5 = scmp.eq.s32.totalorder %s625_s8, 1 }
   0x9   : > { %p889_p4 = por %p206_p2, %p205_p1  ;;  %s190_s12 = ssub.s32 %s799_s28, %s1016_s9 }
   0xa   : > { %p628_p6 = scmp.ge.s32.totalorder %s803_s29, 1  ;;  %p193_p7 = scmp.eq.s32.totalorder %s190_s12, 0 }
   0xb   : > { %p896_p8 = por %p212_p5, %p211_p3  ;;  %p259_p9 = scmp.lt.s32.totalorder %s803_s29, 3 }
   0xc   : > { %s902_s14 = scalar_select %p193_p7, %s791_s26, %s195_s10  }
   0xd   : > { %p260_p10 = pnand %p628_p6, %p259_p9 }
   0xe   : > { %p294_p11 = scmp.lt.s32.totalorder (!%p260_p10), %s795_s27, 1  ;;  %s291_s10 = sand.u32 (!%p260_p10), 1, %s787_s25  }
   0xf   : > { %263 = sbr.rel (%p260_p10) target bundleno = 458 (0x1ca), region = 48  ;;  %s629_s12 = sshll.u32 (!%p260_p10), %s291_s10, 4 }
  0x10   : > { %s293_s19 = scalar_lea.vmem (!%p260_p10), [#allocation2], %s629_s12  ;;  %s745_s12 = scalar_lea.hbm (!%p260_p10), %s1007_s7, 32 }
  0x11   : > { %s543_s20 = sshll.u32 (!%p260_p10), %s293_s19, 4  ;;  %s544_s20 = int_to_ptr.vmem [resolvable:$true] %s543_s20 }
  0x14   : > { %v364_v0 = vld [vmem:[%s1002_s2 + $0x8] sm:$0xff]  ;;  %v805_v2 = vmov 0   ;;  %v363_v3 = vld [vmem:[%s1002_s2] sm:$0xff]  ;;  %s295_s23 = scalar_select %p294_p11, %s795_s27, 1  ;;  %vm304_vm0 = vcmask 523264   ;;  %v806_v10 = vmov 16.0  }
  0x15   : > { %v350_v1 = vld [vmem:[%s1001_s1 + $0x8] sm:$0xff]  ;;  %711 = vset.pattern.permute.xlu1 %v805_v2  ;;  %710 = vset.pattern.permute.xlu0 %v805_v2  ;;  %v349_v4 = vld [vmem:[%s1001_s1] sm:$0xff]  ;;  %713 = vrcp.f32 %v806_v10  ;;  %v384_v48 = vld [vmem:[%s1004_s4 + $0x18] sm:$0xff]  ;;  %vm405_vm5 = vcmask 130048   ;;  %vm497_vm6 = vcmask 261120  }
  0x16   : > { %372 = vperm.xlu1 %711, %v364_v0   ;;  %358 = vperm.xlu0 %710, %v350_v1   ;;  %v381_v5 = vld [vmem:[%s1004_s4] sm:$0xff]  ;;  %v382_v6 = vld [vmem:[%s1004_s4 + $0x8] sm:$0xff]  ;;  %s643_s15 = sshll.u32 %s295_s23, 4  ;;  %v383_v51 = vld [vmem:[%s1004_s4 + $0x10] sm:$0xff] }
  0x17   : > { %712 = vset.pattern.permute.xlu2 %v805_v2  ;;  %s301_s18 = scalar_lea.vmem %s1000_s0, %s643_s15  ;;  %v486_v7 = vld [vmem:[%s1006_s6 + $0x8] sm:$0xff]  ;;  %v485_v57 = vld [vmem:[%s1006_s6] sm:$0xff]  ;;  %v379_v63 = vld [vmem:[%s1003_s3 + $0x10] sm:$0xff]  ;;  %s644_s15 = sshll.u32 %s795_s27, 4 }
  0x18   : > { %v302_v8 = vld [vmem:[%s301_s18] sm:$0xff]  ;;  %v303_v9 = vld [vmem:[%s301_s18 + $0x8] sm:$0xff]  ;;  %402 = vperm.xlu2 %712, %v384_v48   ;;  %v380_v1 = vld [vmem:[%s1003_s3 + $0x18] sm:$0xff]  ;;  %s542_s18 = scalar_lea.hbm %s1007_s7, %s644_s15  ;;  %s530_s27 = scalar_lea.sflag [#allocation3], %s291_s10 }
  0x19   : > { %v305_v11 = vsel %vm304_vm0, %v302_v8, 0.0  ;;  %v306_v12 = vsel %vm304_vm0, %v303_v9, 0.0  ;;  %v377_v62 = vld [vmem:[%s1003_s3] sm:$0xff]  ;;  %v378_v0 = vld [vmem:[%s1003_s3 + $0x8] sm:$0xff]  ;;  %s545_s21 = sshll.u32 %s542_s18, 4  ;;  %s546_s21 = int_to_ptr.hbm [resolvable:$true] %s545_s21 }
  0x1a   : > { %v307_v13 = vadd.f32 %v306_v12, %v305_v11  ;;  %s739_s22 = sshra.s32 %s546_s21, 4  ;;  %s740_s22 = int_to_ptr.hbm [resolvable:$true] %s739_s22 }
  0x1b   : > { %v714_v15 = vpop.eup %713  ;;  %s741_s23 = scalar_lea.hbm %s740_s22, 16  ;;  %p746_p1 = scmp.lt.s32.totalorder %s740_s22, %s1007_s7 }
  0x1c   : > { %v308_v14 = vrot.slane %v307_v13, 4  ;;  %v315_v17 = vmul.f32 16.0, %v714_v15  ;;  %vm319_vm1 = vweird.f32 %v714_v15  ;;  %p742_p12 = scmp.ne.s32.totalorder %s740_s22, %s741_s23  ;;  %p747_p2 = scmp.lt.s32.totalorder %s745_s12, %s741_s23 }
  0x1e   : > { %367 = vperm.xlu1 %711, %v363_v3   ;;  %353 = vperm.xlu0 %710, %v349_v4   ;;  %v309_v16 = vadd.f32 %v308_v14, %v307_v13  ;;  %v316_v19 = vsub.f32 1.0, %v315_v17  ;;  %p743_p13 = pnand %p742_p12, %p889_p4  ;;  %p748_p3 = por %p747_p2, %p746_p1 }
  0x20   : > { %v310_v18 = vrot.slane %v309_v16, 2  ;;  %v317_v21 = vmul.f32 %v714_v15, %v316_v19  ;;  %397 = vperm.xlu2 %712, %v383_v51   ;;  %v484_v51 = vld [vmem:[%s1005_s5 + $0x8] sm:$0xff]  ;;  %p744_p0 = pneg %p743_p13 }
  0x22   : > { %v311_v20 = vadd.f32 %v310_v18, %v309_v16  ;;  %v318_v23 = vadd.f32 %v714_v15, %v317_v21  ;;  %p749_p5 = pnand %p748_p3, %p744_p0 }
  0x24   : > { %v312_v22 = vrot.slane %v311_v20, 1  ;;  %v320_v25 = vsel %vm319_vm1, %v714_v15, %v318_v23 }
  0x26   : > { %387 = vperm.xlu1 %711, %v381_v5   ;;  %392 = vperm.xlu0 %710, %v382_v6   ;;  %v313_v24 = vadd.f32 %v312_v22, %v311_v20 }
  0x28   : > { %v321_v26 = vmul.f32 %v320_v25, %v313_v24  ;;  %489 = vperm.xlu2 %712, %v485_v57  }
  0x2a   : > { %v322_v27 = vsub.f32 %v302_v8, %v321_v26  ;;  %v323_v28 = vsub.f32 %v303_v9, %v321_v26 }
  0x2c   : > { %v324_v29 = vmul.f32 %v322_v27, %v322_v27  ;;  %v325_v30 = vmul.f32 %v323_v28, %v323_v28 }
  0x2e   : > { %494 = vperm.xlu0 %710, %v486_v7   ;;  %v326_v31 = vsel %vm304_vm0, %v324_v29, 0.0  ;;  %v327_v32 = vsel %vm304_vm0, %v325_v30, 0.0 }
  0x2f   : > { %v328_v33 = vadd.f32 %v327_v32, %v326_v31 }
  0x31   : > { %v329_v34 = vrot.slane %v328_v33, 4 }
  0x33   : > { %v330_v35 = vadd.f32 %v329_v34, %v328_v33 }
  0x35   : > { %v331_v36 = vrot.slane %v330_v35, 2 }
  0x37   : > { %v332_v37 = vadd.f32 %v331_v36, %v330_v35 }
  0x39   : > { %v333_v38 = vrot.slane %v332_v37, 1 }
  0x3b   : > { %v334_v39 = vadd.f32 %v333_v38, %v332_v37 }
  0x3d   : > { %v335_v40 = vmul.f32 %v334_v39, %v320_v25 }
  0x3f   : > { %v336_v41 = vadd.f32 1e-05, %v335_v40 }
  0x41   : > { %715 = vrsqrt.f32 %v336_v41  ;;  %vm343_vm2 = vweird.f32 %v336_v41 }
  0x47   : > { %v716_v42 = vpop.eup %715 }
  0x48   : > { %v338_v43 = vmul.f32 %v716_v42, %v336_v41  ;;  %vm344_vm3 = vweird.f32 %v716_v42 }
  0x49   : > { %vm345_vm4 = vmor %vm343_vm2, %vm344_vm3 }
  0x4a   : > { %v339_v44 = vmul.f32 %v716_v42, %v338_v43 }
  0x4c   : > { %v340_v45 = vmul.f32 0.5, %v339_v44 }
  0x4e   : > { %v341_v46 = vsub.f32 1.5, %v340_v45 }
  0x50   : > { %v342_v47 = vmul.f32 %v716_v42, %v341_v46 }
  0x52   : > { %v346_v49 = vsel %vm345_vm4, %v716_v42, %v342_v47 }
  0x53   : > { %v348_v50 = vmul.f32 %v346_v49, %v323_v28  ;;  %v347_v56 = vmul.f32 %v346_v49, %v322_v27 }
  0x72   : > { %v403_v2 = vpop.permute.xlu2 %402 }
  0x7a   : > { %v398_v6 = vpop.permute.xlu2 %397 }
  0x88   : > { %v373_v52 = vpop.permute.xlu1 %372  ;;  %v359_v53 = vpop.permute.xlu0 %358 }
  0x89   : > { %v362_v54 = vmul.f32 %v359_v53, %v348_v50  ;;  %v483_v50 = vld [vmem:[%s1005_s5] sm:$0xff] }
  0x8b   : > { %v376_v55 = vadd.f32 %v373_v52, %v362_v54  ;;  %v490_v52 = vpop.permute.xlu2 %489 }
  0x8d   : > { %432 = vmatpush.msra.mxu0 %v376_v55  ;;  %645 = vmatpush.msra.mxu2 %v376_v55 }
  0x90   : > { %v354_v58 = vpop.permute.xlu0 %353  ;;  %v368_v60 = vpop.permute.xlu1 %367 }
  0x91   : > { %v361_v59 = vmul.f32 %v354_v58, %v347_v56 }
  0x93   : > { %v375_v61 = vadd.f32 %v368_v60, %v361_v59 }
  0x95   : > { %433 = vmatpush.msra.mxu0 %v375_v61  ;;  %646 = vmatpush.msra.mxu2 %v375_v61 }
  0x96   : > { %632 = vmatmul.msk.f32.vlgmr.msra.gmra.mxu0 %vm405_vm5, %v377_v62  ;;  %634 = vmatmul.msk.f32.vlgmr.msra.gmra.mxu2 %vm405_vm5, %v379_v63 }
  0x98   : > { %v388_v4 = vpop.permute.xlu1 %387  ;;  %v393_v9 = vpop.permute.xlu0 %392 }
  0x9e   : > { %633 = vmatmul.msk.f32.gmra.mxu0 %vm405_vm5, %v378_v0  ;;  %635 = vmatmul.msk.f32.gmra.mxu2 %vm405_vm5, %v380_v1 }
  0xa0   : > { %v495_v55 = vpop.permute.xlu0 %494 }
 0x113   : > { %v435_v3 = vpop.f32.mrf.mxu0 }
 0x114   : > { %v436_v5 = vadd.f32 %v435_v3, %v388_v4 }
 0x116   : > { %v451_v13 = vmul.f32 0.044715, %v436_v5  ;;  %v447_v48 = vmul.f32 0.5, %v436_v5 }
 0x118   : > { %v455_v18 = vmul.f32 %v451_v13, %v436_v5 }
 0x119   : > { %v441_v7 = vpop.f32.mrf.mxu2 }
 0x11a   : > { %v442_v8 = vadd.f32 %v441_v7, %v398_v6  ;;  %v459_v24 = vmul.f32 %v455_v18, %v436_v5 }
 0x11b   : > { %v438_v10 = vpop.f32.mrf.mxu0 }
 0x11c   : > { %v439_v11 = vadd.f32 %v438_v10, %v393_v9  ;;  %v453_v12 = vmul.f32 0.044715, %v442_v8  ;;  %v463_v29 = vadd.f32 %v459_v24, %v436_v5  ;;  %v449_v42 = vmul.f32 0.5, %v442_v8 }
 0x11e   : > { %v457_v14 = vmul.f32 %v453_v12, %v442_v8  ;;  %v452_v15 = vmul.f32 0.044715, %v439_v11  ;;  %v467_v33 = vmul.f32 0.7978846, %v463_v29  ;;  %v448_v45 = vmul.f32 0.5, %v439_v11 }
 0x120   : > { %v461_v16 = vmul.f32 %v457_v14, %v442_v8  ;;  %v456_v17 = vmul.f32 %v452_v15, %v439_v11 }
 0x121   : > { %v444_v19 = vpop.f32.mrf.mxu2 }
 0x122   : > { %v445_v20 = vadd.f32 %v444_v19, %v403_v2  ;;  %v460_v21 = vmul.f32 %v456_v17, %v439_v11  ;;  %v465_v23 = vadd.f32 %v461_v16, %v442_v8 }
 0x124   : > { %v454_v22 = vmul.f32 0.044715, %v445_v20  ;;  %v464_v25 = vadd.f32 %v460_v21, %v439_v11  ;;  %v469_v28 = vmul.f32 0.7978846, %v465_v23  ;;  %v450_v37 = vmul.f32 0.5, %v445_v20 }
 0x126   : > { %v458_v26 = vmul.f32 %v454_v22, %v445_v20  ;;  %v468_v30 = vmul.f32 0.7978846, %v464_v25  ;;  %717 = vtanh.f32 %v469_v28 }
 0x128   : > { %v462_v27 = vmul.f32 %v458_v26, %v445_v20  ;;  %719 = vtanh.f32 %v468_v30 }
 0x12a   : > { %v466_v31 = vadd.f32 %v462_v27, %v445_v20 }
 0x12c   : > { %v470_v32 = vmul.f32 0.7978846, %v466_v31  ;;  %v718_v34 = vpop.eup %717 }
 0x12d   : > { %v477_v39 = vadd.f32 1.0, %v718_v34 }
 0x12e   : > { %721 = vtanh.f32 %v470_v32  ;;  %v720_v35 = vpop.eup %719 }
 0x12f   : > { %723 = vtanh.f32 %v467_v33  ;;  %v476_v43 = vadd.f32 1.0, %v720_v35  ;;  %v481_v44 = vmul.f32 %v477_v39, %v449_v42 }
 0x131   : > { %v480_v47 = vmul.f32 %v476_v43, %v448_v45 }
 0x134   : > { %v722_v36 = vpop.eup %721 }
 0x135   : > { %v478_v38 = vadd.f32 1.0, %v722_v36  ;;  %v724_v40 = vpop.eup %723 }
 0x136   : > { %v475_v46 = vadd.f32 1.0, %v724_v40 }
 0x137   : > { %v482_v41 = vmul.f32 %v478_v38, %v450_v37 }
 0x138   : > { %v479_v49 = vmul.f32 %v475_v46, %v447_v48 }
 0x139   : > { %516 = vmatpush.msra.mxu1 %v482_v41  ;;  %647 = vmatpush.msra.mxu3 %v482_v41 }
 0x13b   : > { %517 = vmatpush.msra.mxu1 %v481_v44  ;;  %648 = vmatpush.msra.mxu3 %v481_v44 }
 0x13d   : > { %518 = vmatpush.msra.mxu1 %v480_v47  ;;  %649 = vmatpush.msra.mxu3 %v480_v47 }
 0x13f   : > { %519 = vmatpush.msra.mxu1 %v479_v49  ;;  %650 = vmatpush.msra.mxu3 %v479_v49 }
 0x140   : > { %636 = vmatmul.msk.f32.vlgmr.msra.gmra.mxu1 %vm497_vm6, %v483_v50  ;;  %637 = vmatmul.msk.f32.vlgmr.msra.gmra.mxu3 %vm497_vm6, %v484_v51 }
 0x1bd   : > { %v521_v53 = vpop.f32.mrf.mxu1 }
 0x1be   : > { %v522_v54 = vadd.f32 %v521_v53, %v490_v52 }
 0x1c0   : > { %527 = vst.msk [vmem:[%s293_s19] sm:$0xff] %vm304_vm0, %v522_v54 }
 0x1c3   : > { %v524_v56 = vpop.f32.mrf.mxu3 }
 0x1c4   : > { %v525_v57 = vadd.f32 %v524_v56, %v495_v55 }
 0x1c6   : > { %528 = vst.msk [vmem:[%s293_s19 + $0x8] sm:$0xff] %vm304_vm0, %v525_v57 }
 0x1c7   : > { %752 = shalt.err (!%p749_p5)
}
 0x1c8   : > { %s807_s10 = smov 128   ;;  %s808_s17 = smov 8  }
 0x1c9   : > { %651 = dma.vmem_to_hbm [thread:$0]  (%p889_p4), %s544_s20, 256, %s546_s21, %s530_s27, %s807_s10, %s807_s10, %s808_s17  }
 0x1ca PF: > { %p657_p6 = scmp.ge.s32.totalorder %s803_s29, 2  ;;  %s560_s18 = sand.u32 1, %s783_s24  }
 0x1cb   : > { %s561_s19 = scalar_lea.sflag [#allocation3], %s560_s18 }
 0x1cc   : > { %p654_p7 = pnand %p657_p6, %p896_p8 }
 0x1ce   : > { %p655_p9 = pneg %p654_p7 }
 0x1d0   : > { %778 = dma.done.wait (%p655_p9), %s561_s19, 256  }
 0x1d1   : > { %780 = vsyncadd (%p655_p9), %s561_s19, 4294967040  ;;  %s20_s29 = sadd.s32 1, %s803_s29   ;;  %s1010_s24 = smov %s787_s25 }
 0x1d2   : > { %p17_p10 = scmp.ge.s32.totalorder %s20_s29, 4   ;;  %s1011_s25 = smov %s791_s26 }
 0x1d3   : > { %s1012_s26 = smov %s902_s14  ;;  %s1013_s27 = smov %s799_s28 }
 0x1d4   : > { %s1014_s28 = smov %s1016_s9  ;;  %19 = sbr.rel (!%p17_p10) target bundleno = 4 (0x4), region = 83 }
 0x1d9   :  { %567 = vsyncpa [#allocation3], 1 }
 0x1da   :  { %569 = vsyncpa [#allocation3 + $0x1], 1 }

</bundles_post_ra>
